<compile_context>
chip_gen: v6e
topology: v6e:2x2x1
jax: 0.10.0
libtpu: 0.0.40
codegen_flags: <defaults>
</compile_context>

<pallas_src>
import jax
import jax.numpy as jnp
from jax import lax
from jax.experimental import pallas as pl
from jax.experimental.pallas import tpu as pltpu

NUM_CLS = 10
THRESH = 0.1
# Default class attribute TARGETS = (7, 0, 0, 0, 0, 0, 0, 0, 0, 0)
TARGETS_TABLE = (7, 0, 0, 0, 0, 0, 0, 0, 0, 0)
TARGET_FOR_CLASS0 = 7   # TARGETS[0]
TARGET_OTHERWISE = 0    # TARGETS[k], k > 0


def _cw_targeted_kernel(logits_ref, gt_ref, loss_ref):
    # logits_ref: [N, C] (VMEM, input dtype)
    # gt_ref:     [N, 1] i32 (VMEM)
    # loss_ref:   [1, 1] f32 (SMEM)
    n = gt_ref.shape[0]
    c = logits_ref.shape[1]

    # torch.gather with a [1, N] index only ever reads row 0 of pred_logits.
    row = logits_ref[0:1, :].astype(jnp.float32)                   # [1, C]
    row_b = jnp.broadcast_to(row, (n, c))                          # [N, C]

    gt = gt_ref[...].astype(jnp.int32)                             # [N, 1]
    # TARGETS = (7, 0, ..., 0): target class is 7 iff gt == 0, else 0.
    tgt = jnp.where(gt == 0, TARGET_FOR_CLASS0, TARGET_OTHERWISE)  # [N, 1]

    col_ids = lax.broadcasted_iota(jnp.int32, (n, c), 1)           # [N, C]
    onehot_gt = col_ids == gt                                      # [N, C]
    onehot_tgt = col_ids == tgt                                    # [N, C]

    # Single fused lane reduction: (correct_score - target_score) per sample.
    diff = jnp.where(onehot_gt, row_b, 0.0) - jnp.where(onehot_tgt, row_b, 0.0)
    score_diff = jnp.sum(diff, axis=-1, keepdims=True)             # [N, 1]

    per_elem = jnp.maximum(score_diff + THRESH, 0.0)               # relu(c + t - tgt)
    # loss = -mean(relu(...)); constant multiply instead of divide + negate.
    loss_ref[0, 0] = jnp.sum(per_elem) * (-1.0 / n)


def targeted_classification_objective(pred_logits, gt_label):
    """pred_logits: [N, C] float, gt_label: [N, 1] (or [N]) int. Scalar loss."""
    if gt_label.ndim != 2 or gt_label.shape[-1] != 1:
        gt_label = gt_label.reshape(-1, 1)
    if gt_label.dtype != jnp.int32:
        gt_label = gt_label.astype(jnp.int32)

    loss = pl.pallas_call(
        _cw_targeted_kernel,
        out_shape=jax.ShapeDtypeStruct((1, 1), jnp.float32),
        in_specs=[
            pl.BlockSpec(memory_space=pltpu.MemorySpace.VMEM),
            pl.BlockSpec(memory_space=pltpu.MemorySpace.VMEM),
        ],
        out_specs=pl.BlockSpec(memory_space=pltpu.MemorySpace.SMEM),
    )(pred_logits, gt_label)
    return loss[0, 0]


def _reference(pred_logits, gt_label):
    """Plain-JAX replica of the PyTorch forward for verification."""
    targets = jnp.asarray(TARGETS_TABLE, dtype=jnp.int32)
    gt = gt_label.reshape(-1)
    tgt = targets[gt]
    # torch.gather with a [1, N] index reads row 0 only.
    correct = pred_logits[0, gt].astype(jnp.float32)
    target = pred_logits[0, tgt].astype(jnp.float32)
    return -jnp.mean(jnp.maximum(correct + THRESH - target, 0.0))


if __name__ == "__main__":
    key = jax.random.PRNGKey(0)
    k1, k2 = jax.random.split(key)
    N, C = 8, NUM_CLS
    pred_logits = jax.random.normal(k1, (N, C), dtype=jnp.float32)
    gt_label = jax.random.randint(k2, (N, 1), 0, C, dtype=jnp.int32)

    loss = targeted_classification_objective(pred_logits, gt_label)
    jax.block_until_ready(loss)

    ref = _reference(pred_logits, gt_label)
    assert jnp.allclose(loss, ref, atol=1e-5, rtol=1e-5), (loss, ref)
    print("KERNEL_OK")
</pallas_src>

<mosaic_0001>
module attributes {stable_mosaic.version = 11 : i64} {
  func.func @_cw_targeted_kernel(%arg0: memref<8x10xf32, #tpu.memory_space<vmem>>, %arg1: memref<8x1xi32, #tpu.memory_space<vmem>>, %arg2: memref<1x1xf32, #tpu.memory_space<smem>>) attributes {dimension_semantics = [], scalar_prefetch = 0 : i64, scratch_operands = 0 : i64, tpu.core_type = #tpu.core_type<tc>} {
    %c0 = arith.constant 0 : index
    %c0_0 = arith.constant 0 : index
    %0 = vector.load %arg0[%c0, %c0_0] : memref<8x10xf32, #tpu.memory_space<vmem>>, vector<1x10xf32>
    %1 = vector.shape_cast %0 : vector<1x10xf32> to vector<1x10xf32>
    %2 = vector.broadcast %1 : vector<1x10xf32> to vector<8x10xf32>
    %c0_1 = arith.constant 0 : index
    %c0_2 = arith.constant 0 : index
    %3 = vector.load %arg1[%c0_1, %c0_2] : memref<8x1xi32, #tpu.memory_space<vmem>>, vector<8x1xi32>
    %c0_i32 = arith.constant 0 : i32
    %4 = vector.broadcast %c0_i32 : i32 to vector<8x1xi32>
    %5 = arith.cmpi eq, %3, %4 : vector<8x1xi32>
    %c7_i32 = arith.constant 7 : i32
    %c0_i32_3 = arith.constant 0 : i32
    %6 = vector.broadcast %c7_i32 : i32 to vector<8x1xi32>
    %7 = vector.broadcast %c0_i32_3 : i32 to vector<8x1xi32>
    %8 = arith.select %5, %6, %7 : vector<8x1xi1>, vector<8x1xi32>
    %9 = tpu.iota {dimensions = array<i32: 1>} : vector<8x10xi32>
    %10 = vector.broadcast %3 : vector<8x1xi32> to vector<8x10xi32>
    %11 = arith.cmpi eq, %9, %10 : vector<8x10xi32>
    %12 = vector.broadcast %8 : vector<8x1xi32> to vector<8x10xi32>
    %13 = arith.cmpi eq, %9, %12 : vector<8x10xi32>
    %cst = arith.constant 0.000000e+00 : f32
    %14 = vector.broadcast %cst : f32 to vector<8x10xf32>
    %15 = arith.select %11, %2, %14 : vector<8x10xi1>, vector<8x10xf32>
    %cst_4 = arith.constant 0.000000e+00 : f32
    %16 = vector.broadcast %cst_4 : f32 to vector<8x10xf32>
    %17 = arith.select %13, %2, %16 : vector<8x10xi1>, vector<8x10xf32>
    %18 = arith.subf %15, %17 : vector<8x10xf32>
    %cst_5 = arith.constant dense<0.000000e+00> : vector<8xf32>
    %19 = vector.multi_reduction <add>, %18, %cst_5 [1] : vector<8x10xf32> to vector<8xf32>
    %20 = vector.shape_cast %19 : vector<8xf32> to vector<8x1xf32>
    %cst_6 = arith.constant 1.000000e-01 : f32
    %21 = vector.broadcast %cst_6 : f32 to vector<8x1xf32>
    %22 = arith.addf %20, %21 : vector<8x1xf32>
    %cst_7 = arith.constant 0.000000e+00 : f32
    %23 = vector.broadcast %cst_7 : f32 to vector<8x1xf32>
    %24 = arith.maximumf %22, %23 : vector<8x1xf32>
    %25 = vector.shape_cast %24 : vector<8x1xf32> to vector<1x8x1xf32>
    %cst_8 = arith.constant dense<0.000000e+00> : vector<1xf32>
    %26 = vector.multi_reduction <add>, %25, %cst_8 [1, 2] : vector<1x8x1xf32> to vector<1xf32>
    %27 = vector.shape_cast %26 : vector<1xf32> to vector<1x1x1xf32>
    %28 = vector.extract %27[0, 0, 0] : f32 from vector<1x1x1xf32>
    %cst_9 = arith.constant -1.250000e-01 : f32
    %29 = arith.mulf %28, %cst_9 : f32
    %c0_10 = arith.constant 0 : index
    %c0_11 = arith.constant 0 : index
    %30 = memref.load %arg2[%c0_10, %c0_11] : memref<1x1xf32, #tpu.memory_space<smem>>
    memref.store %29, %arg2[%c0_10, %c0_11] : memref<1x1xf32, #tpu.memory_space<smem>>
    return
  }
}

</mosaic_0001>

<bundles_post_ra>
// kernel: tpu_custom_call.1
= control target key start
LH: loop header
LB: loop body
LE: loop exit
PB: predicated region body
PF: predicated region fallthrough
CT: control target
= control target key end

     0   :  { %s108_s0 = inlined_call_operand.vmem [shape: f32[8,10], index: 0, kind: input, shape index: {}]   ;;  %s109_s1 = inlined_call_operand.vmem [shape: s32[8,1], index: 1, kind: input, shape index: {}]   ;;  %s110_s2 = inlined_call_operand.hbm [shape: f32[1,1], index: 2, kind: output, shape index: {}]  }
   0x1   :  { %v17_v0 = vld [vmem:[%s109_s1] sm:$0xff] }
   0x2   :  { %7 = vsyncpa [#allocation3], 0  ;;  %v82_v1 = vmov 0   ;;  %vm18_vm0 = vcmp.eq.s32.totalorder %v17_v0, 0  ;;  %v20_v3 = vlaneseq  ;;  %v66_v6 = vld [vmem:[%s108_s0] ss:$0 sm:$0xff] }
   0x3   :  { %71 = vset.pattern.permute.xlu0 %v82_v1  ;;  %v19_v2 = vsel %vm18_vm0, 7, %v82_v1  ;;  %vm33_vm3 = vcmask 80896   ;;  %vm39_vm4 = vcmask 7168   ;;  %s83_s13 = smov [#allocation2]  }
   0x4   :  { %23 = vperm.xlu0 %71, %v17_v0   ;;  %v21_v4 = vand.u32 127, %v20_v3 }
   0x8   :  { %27 = vperm.xlu0 %71, %v19_v2  }
  0x7f   :  { %v24_v5 = vpop.permute.xlu0 %23 }
  0x80   :  { %vm25_vm1 = vcmp.eq.s32.totalorder %v21_v4, %v24_v5 }
  0x81   :  { %v30_v8 = vsel %vm25_vm1, %v66_v6, 0.0 }
  0x83   :  { %v28_v7 = vpop.permute.xlu0 %27 }
  0x84   :  { %vm29_vm2 = vcmp.eq.s32.totalorder %v21_v4, %v28_v7 }
  0x85   :  { %v31_v9 = vsel %vm29_vm2, %v66_v6, 0.0 }
  0x86   :  { %v32_v10 = vsub.f32 %v30_v8, %v31_v9 }
  0x88   :  { %v34_v11 = vsel %vm33_vm3, %v32_v10, 0.0 }
  0x89   :  { %35 = vadd.xlane.f32.xlu1 %v34_v11 }
 0x112   :  { %v36_v12 = vpop.xlane.xlu1 %35 }
 0x113   :  { %v37_v13 = vadd.f32 0.1, %v36_v12 }
 0x115   :  { %v38_v14 = vmax.f32 %v37_v13, 0.0 }
 0x117   :  { %v40_v15 = vsel %vm39_vm4, %v38_v14, 0.0 }
 0x118   :  { %41 = vadd.xlane.f32.xlu1 %v40_v15 }
 0x1a1   :  { %v42_v16 = vpop.xlane.xlu1 %41 }
 0x1a2   :  { %v43_v17 = vrot.slane %v42_v16, 4 }
 0x1a4   :  { %v44_v18 = vadd.f32 %v43_v17, %v42_v16 }
 0x1a6   :  { %v45_v19 = vrot.slane %v44_v18, 2 }
 0x1a8   :  { %v46_v20 = vadd.f32 %v45_v19, %v44_v18 }
 0x1aa   :  { %v47_v21 = vrot.slane %v46_v20, 1 }
 0x1ac   :  { %v48_v22 = vadd.f32 %v47_v21, %v46_v20 }
 0x1ae   :  { %67 = vpush %v48_v22 }
 0x1df   :  { %s68_s0 = spop %67 }
 0x1e0   :  { %s50_s1 = smul.f32 -0.125, %s68_s0 }
 0x1e2   :  { %52 = sst [smem:[#allocation2]] %s50_s1 }
 0x1e3   :  { %60 = dma.smem_to_hbm %s83_s13, 16, %s110_s2, [#allocation3]  }
 0x1e4   :  { %80 = dma.done.wait [#allocation3], 16  }
 0x1e5   :  { %81 = vsyncadd [#allocation3], 4294967280 }
 0x1e6   :  { %64 = sfence }
 0x1e7   :  { %65 = vsyncpa [#allocation3], 1 }

</bundles_post_ra>
